<compile_context>
chip_gen: v7x
topology: tpu7x:2x2x1
jax: 0.10.0
libtpu: 0.0.40
codegen_flags: <defaults>
</compile_context>

<pallas_src>
import functools

import numpy as np
import jax
import jax.numpy as jnp
from jax.experimental import pallas as pl
from jax.experimental.pallas import tpu as pltpu

_HIGHEST = jax.lax.Precision.HIGHEST


def _round_up(v, m):
    return (v + m - 1) // m * m


def _choose_tiles(n_nodes, tile_rows):
    """Padded node count Np and row-tile TM; guarantees >= 2 row blocks when
    possible so the parallel grid axis can feed both v7x TensorCores."""
    np_pad = _round_up(max(n_nodes, 16), 16)
    if np_pad <= 2 * tile_rows:
        return np_pad, np_pad // 2          # two row blocks
    np_pad = _round_up(n_nodes, tile_rows)
    return np_pad, tile_rows


# ---------------- projection pre-pass: x @ [W_l | W_r] + [b_l | b_r] ----------
def _proj_kernel(x_ref, w_ref, b_ref, o_ref):
    o_ref[...] = (jnp.dot(x_ref[...], w_ref[...],
                          preferred_element_type=jnp.float32,
                          precision=_HIGHEST)
                  + b_ref[...]).astype(o_ref.dtype)


def node_projection(x, w_lr, b_lr, *, tile_m):
    np_pad, din = x.shape
    n2 = w_lr.shape[1]
    return pl.pallas_call(
        _proj_kernel,
        out_shape=jax.ShapeDtypeStruct((np_pad, n2), jnp.float32),
        grid=(np_pad // tile_m,),
        in_specs=[pl.BlockSpec((tile_m, din), lambda i: (i, 0)),
                  pl.BlockSpec((din, n2), lambda i: (0, 0)),
                  pl.BlockSpec((1, n2), lambda i: (0, 0))],
        out_specs=pl.BlockSpec((tile_m, n2), lambda i: (i, 0)),
        compiler_params=pltpu.CompilerParams(
            dimension_semantics=("parallel",)),
    )(x, w_lr, b_lr)


# --------------------------- GATv2 attention kernel ---------------------------
def _gatv2_attn_kernel(xlt_ref, xr_ref, xlhm_ref, adj_ref, ed_ref,
                       we_ref, att_ref, bias_ref, out_ref, *rest,
                       heads, out_ch, edge_dim, want_alpha, neg_slope=0.2):
    """One GATv2Conv layer step for a TM-row block of target nodes.

    xlt_ref  : (HC, Np)       lin_l(x).T   (all sources, lane-dense on Np)
    xr_ref   : (TM, HC)       lin_r(x)     for this target block
    xlhm_ref : (H*Np, C)      lin_l(x) stacked head-major (for fused aggregation)
    adj_ref  : (TM, Np)       0/1 mask (self loops included)
    ed_ref   : (E, TM, Np)    dense edge attributes, feature-major
    we_ref   : (E, HC) SMEM   lin_edge weights (scalar reads)
    att_ref  : (H, C)  SMEM   attention vector (scalar reads)
    bias_ref : (1, C)         output bias (concat=False)
    out_ref  : (TM, C)        mean-over-heads output
    rest     : [alpha_ref (H,TM,Np)] if want_alpha, then acat scratch (TM, H*Np)
    """
    if want_alpha:
        alpha_ref, acat_ref = rest
    else:
        (acat_ref,) = rest
    H, C, E = heads, out_ch, edge_dim

    adj = adj_ref[...]                       # (TM, Np) f32 0/1
    TM, Np = adj.shape
    xlt = xlt_ref[...]                       # (HC, Np)
    xr = xr_ref[...]                         # (TM, HC)
    ed = ed_ref[...]                         # (E, TM, Np)

    for h in range(H):
        # ---- scores with source nodes on the lane axis (full 128-lane density,
        # no (TM,Np,C) temporaries, no XLU cross-lane reduce) -------------------
        score = jnp.zeros((TM, Np), jnp.float32)
        for c in range(C):
            hc = h * C + c
            s = xr[:, hc:hc + 1] + xlt[hc:hc + 1, :]        # (TM,1)+(1,Np)->(TM,Np)
            for e in range(E):                              # edge proj channel hc
                s = s + we_ref[e, hc] * ed[e]
            s = jnp.where(s > 0, s, neg_slope * s)          # LeakyReLU(0.2)
            score = score + att_ref[h, c] * s

        # ---- masked softmax over source nodes sharing this target -------------
        score = jnp.where(adj > 0, score, jnp.float32(-1e30))
        m = jnp.max(score, axis=-1, keepdims=True)
        p = jnp.exp(score - m) * adj
        denom = jnp.sum(p, axis=-1, keepdims=True)
        alpha = p / jnp.maximum(denom, jnp.float32(1e-30))  # rows w/o edges -> 0
        acat_ref[:, h * Np:(h + 1) * Np] = alpha
        if want_alpha:
            alpha_ref[h] = alpha

    # ---- single fused aggregation matmul over all heads (MXU) ------------------
    #   [alpha_0 | ... | alpha_{H-1}] @ [xl_0; ...; xl_{H-1}]   -> (TM, C)
    acc = jnp.dot(acat_ref[...], xlhm_ref[...],
                  preferred_element_type=jnp.float32, precision=_HIGHEST)
    valid = (jnp.sum(adj, axis=-1, keepdims=True) > 0).astype(jnp.float32)
    out_ref[...] = ((acc * (1.0 / H) + bias_ref[...]) * valid).astype(out_ref.dtype)


def gatv2_attention(xl_t, xr, xl_hm, adj, edense, w_e, att, bias2d, *,
                    heads, out_ch, tile_m, want_alpha):
    HC, Np = xl_t.shape
    E = edense.shape[0]
    C = out_ch
    TM = tile_m
    assert Np % TM == 0 and TM % 8 == 0
    grid = (Np // TM,)

    kernel = functools.partial(_gatv2_attn_kernel, heads=heads, out_ch=C,
                               edge_dim=E, want_alpha=want_alpha)

    in_specs = [
        pl.BlockSpec((HC, Np), lambda i: (0, 0)),           # lin_l(x).T (all sources)
        pl.BlockSpec((TM, HC), lambda i: (i, 0)),           # lin_r(x) target block
        pl.BlockSpec((heads * Np, C), lambda i: (0, 0)),    # lin_l(x) head-major stack
        pl.BlockSpec((TM, Np), lambda i: (i, 0)),           # adjacency mask block
        pl.BlockSpec((E, TM, Np), lambda i: (0, i, 0)),     # edge attrs, feature-major
        pl.BlockSpec(memory_space=pltpu.MemorySpace.SMEM),  # W_edge (scalar reads)
        pl.BlockSpec(memory_space=pltpu.MemorySpace.SMEM),  # att    (scalar reads)
        pl.BlockSpec((1, C), lambda i: (0, 0)),             # bias
    ]

    if want_alpha:
        out_shape = (jax.ShapeDtypeStruct((Np, C), jnp.float32),
                     jax.ShapeDtypeStruct((heads, Np, Np), jnp.float32))
        out_specs = (pl.BlockSpec((TM, C), lambda i: (i, 0)),
                     pl.BlockSpec((heads, TM, Np), lambda i: (0, i, 0)))
    else:
        out_shape = jax.ShapeDtypeStruct((Np, C), jnp.float32)
        out_specs = pl.BlockSpec((TM, C), lambda i: (i, 0))

    # Explicit scoped-VMEM limit sized from the real per-step block footprint
    # (double-buffered), capped well below v7x's 64 MiB physical VMEM.
    blk = 4 * (HC * Np + TM * HC + heads * Np * C + TM * Np + E * TM * Np
               + TM * C + TM * heads * Np)
    if want_alpha:
        blk += 4 * heads * TM * Np
    vmem_limit = int(min(max(2 * blk + (4 << 20), 32 << 20), 56 << 20))

    cost = pl.CostEstimate(
        flops=int(2 * Np * Np * heads * C * (E + 4) + 2 * Np * heads * Np * C),
        transcendentals=int(heads * Np * Np),
        bytes_accessed=int(4 * (2 * HC * Np + heads * Np * C + Np * Np
                                + E * Np * Np + Np * C
                                + (heads * Np * Np if want_alpha else 0))))

    return pl.pallas_call(
        kernel,
        out_shape=out_shape,
        grid=grid,
        in_specs=in_specs,
        out_specs=out_specs,
        scratch_shapes=[pltpu.VMEM((TM, heads * Np), jnp.float32)],
        compiler_params=pltpu.CompilerParams(
            dimension_semantics=("parallel",),
            vmem_limit_bytes=vmem_limit),
        cost_estimate=cost,
    )(xl_t, xr, xl_hm, adj, edense, w_e, att, bias2d)


# ------------------------------ host-side glue --------------------------------
def _augment_edges(edge_index, edge_attr, num_nodes):
    """remove_self_loops + add_self_loops(fill_value='mean'), as GATv2Conv does."""
    ei = np.asarray(edge_index)
    ea = np.asarray(edge_attr, dtype=np.float32)
    keep = ei[0] != ei[1]
    src, dst, ea = ei[0][keep], ei[1][keep], ea[keep]
    loop_attr = np.zeros((num_nodes, ea.shape[1]), np.float32)
    cnt = np.zeros((num_nodes,), np.float32)
    np.add.at(loop_attr, dst, ea)
    np.add.at(cnt, dst, 1.0)
    loop_attr = loop_attr / np.maximum(cnt, 1.0)[:, None]
    loop = np.arange(num_nodes, dtype=src.dtype)
    return (np.concatenate([src, loop]),
            np.concatenate([dst, loop]),
            np.concatenate([ea, loop_attr], axis=0))


def graph_latent_encoder(x, edge_index, edge_attr, batch, params, *, heads,
                         num_graphs, tile_rows=128):
    """Forward of GraphLatentEncoder: GATv2Conv stack + global_mean_pool.

    Returns (latent, return_edge_index, attention_weights, node_embeddings).
    """
    N = int(x.shape[0])
    src, dst, ea = _augment_edges(edge_index, edge_attr, N)
    edge_dim = ea.shape[-1]
    Np, TM = _choose_tiles(N, tile_rows)

    # Dense adjacency + feature-major dense edge attributes (lane-dense Np minor).
    adj_np = np.zeros((Np, Np), np.float32)
    adj_np[dst, src] = 1.0
    eden_np = np.zeros((edge_dim, Np, Np), np.float32)
    eden_np[:, dst, src] = ea.T
    # NOTE: adj / edense could be stored bf16 (exact 0/1 mask) / bf16 in
    # production to halve HBM traffic; kept f32 here for the 2e-4 validation.

    adj = jnp.asarray(adj_np)
    edense = jnp.asarray(eden_np)
    h = jnp.zeros((Np, x.shape[1]), jnp.float32).at[:N].set(
        jnp.asarray(x, jnp.float32))

    alpha0 = None
    for i, lp in enumerate(params):
        HC = lp["w_l"].shape[1]
        H = heads
        C = HC // H
        # Hoisted, fused lin_l/lin_r projection (one MXU matmul with 2*HC lanes),
        # computed once per layer and reused by every row-block grid step.
        w_lr = jnp.concatenate([lp["w_l"], lp["w_r"]], axis=1)
        b_lr = jnp.concatenate([lp["b_l"], lp["b_r"]])[None, :]
        xlr = node_projection(h, w_lr, b_lr, tile_m=TM)        # (Np, 2*HC)
        xl = xlr[:, :HC]
        xr = xlr[:, HC:]
        xl_t = xl.T                                            # (HC, Np) lane-dense
        xl_hm = xl.reshape(Np, H, C).transpose(1, 0, 2).reshape(H * Np, C)

        want_alpha = (i == 0)        # only layer 0 returns attention weights
        res = gatv2_attention(xl_t, xr, xl_hm, adj, edense,
                              lp["w_e"], lp["att"], lp["bias"][None, :],
                              heads=H, out_ch=C, tile_m=TM, want_alpha=want_alpha)
        if want_alpha:
            h, alpha0 = res
        else:
            h = res

    node_embeddings = h[:N]

    # global_mean_pool: left to XLA (tiny matmul) per the perf review.
    batch_np = np.asarray(batch)
    counts = np.bincount(batch_np, minlength=num_graphs).astype(np.float32)
    pool = np.zeros((num_graphs, Np), np.float32)
    pool[batch_np, np.arange(N)] = 1.0 / counts[batch_np]
    latent = jnp.dot(jnp.asarray(pool), h, precision=_HIGHEST)

    # Per-edge attention weights for the (self-loop augmented) edge list.
    attention_weights = jnp.transpose(alpha0[:, dst, src])      # (E', heads)
    return_edge_index = jnp.asarray(np.stack([src, dst]).astype(np.int32))
    return latent, return_edge_index, attention_weights, node_embeddings


# ------------------------- pure-JAX reference (check) -------------------------
def _ref_gatv2_layer(x, src, dst, ea, lp, heads):
    N = x.shape[0]
    HC = lp["w_l"].shape[1]
    C = HC // heads
    xl = (jnp.dot(x, lp["w_l"], precision=_HIGHEST) + lp["b_l"]).reshape(N, heads, C)
    xr = (jnp.dot(x, lp["w_r"], precision=_HIGHEST) + lp["b_r"]).reshape(N, heads, C)
    ep = jnp.dot(ea, lp["w_e"], precision=_HIGHEST).reshape(-1, heads, C)
    s = xr[dst] + xl[src] + ep
    s = jnp.where(s > 0, s, 0.2 * s)
    score = jnp.sum(s * lp["att"][None], axis=-1)                 # (E, H)
    m = jax.ops.segment_max(score, dst, num_segments=N)
    p = jnp.exp(score - m[dst])
    den = jax.ops.segment_sum(p, dst, num_segments=N)
    alpha = p / den[dst]
    msg = (xl[src] * alpha[..., None]).reshape(-1, heads * C)
    out = jax.ops.segment_sum(msg, dst, num_segments=N).reshape(N, heads, C)
    return jnp.mean(out, axis=1) + lp["bias"], alpha


def _reference(x, edge_index, edge_attr, batch, params, heads, num_graphs):
    N = x.shape[0]
    src, dst, ea = _augment_edges(edge_index, edge_attr, N)
    src = jnp.asarray(src); dst = jnp.asarray(dst); ea = jnp.asarray(ea)
    h = x.astype(jnp.float32)
    alpha0 = None
    for i, lp in enumerate(params):
        h, alpha = _ref_gatv2_layer(h, src, dst, ea, lp, heads)
        if i == 0:
            alpha0 = alpha
    b = jnp.asarray(batch)
    counts = jax.ops.segment_sum(jnp.ones((N,), jnp.float32), b, num_segments=num_graphs)
    latent = jax.ops.segment_sum(h, b, num_segments=num_graphs) / counts[:, None]
    return latent, alpha0, h


# ----------------------------------- main --------------------------------------
if __name__ == "__main__":
    node_dim = 16
    edge_dim = 8
    gnn_num_layers = 3
    head_num = 4
    gnn_hidden_dim = 32
    latent_dim = 16

    graph_sizes = [5, 7]
    bs = len(graph_sizes)
    N = sum(graph_sizes)
    batch = np.concatenate(
        [np.full(n, g, np.int32) for g, n in enumerate(graph_sizes)])

    # Bidirectional ring edges inside each graph (simple graph, no self loops).
    src_list, dst_list = [], []
    off = 0
    for n in graph_sizes:
        for k in range(n):
            a, b = off + k, off + (k + 1) % n
            src_list += [a, b]
            dst_list += [b, a]
        off += n
    edge_index = np.stack([np.array(src_list), np.array(dst_list)]).astype(np.int32)
    E0 = edge_index.shape[1]

    key = jax.random.PRNGKey(0)
    keys = jax.random.split(key, 2 + 7 * gnn_num_layers)
    x = jax.random.normal(keys[0], (N, node_dim), jnp.float32)
    edge_attr = jax.random.normal(keys[1], (E0, edge_dim), jnp.float32)

    # Deterministic synthetic parameters, one dict per GATv2 layer.
    params = []
    kidx = 2
    for i in range(gnn_num_layers):
        in_dim = node_dim if i == 0 else gnn_hidden_dim
        out_dim = latent_dim if i == gnn_num_layers - 1 else gnn_hidden_dim
        hc = head_num * out_dim

        def glorot(shape, k):
            return jax.random.normal(k, shape, jnp.float32) / np.sqrt(shape[0])

        params.append({
            "w_l": glorot((in_dim, hc), keys[kidx + 0]),
            "b_l": 0.1 * jax.random.normal(keys[kidx + 1], (hc,), jnp.float32),
            "w_r": glorot((in_dim, hc), keys[kidx + 2]),
            "b_r": 0.1 * jax.random.normal(keys[kidx + 3], (hc,), jnp.float32),
            "w_e": glorot((edge_dim, hc), keys[kidx + 4]),
            "att": jax.random.normal(keys[kidx + 5], (head_num, out_dim),
                                     jnp.float32) / np.sqrt(out_dim),
            "bias": 0.01 * jax.random.normal(keys[kidx + 6], (out_dim,), jnp.float32),
        })
        kidx += 7

    latent, ret_ei, att_w, node_emb = graph_latent_encoder(
        x, edge_index, edge_attr, batch, params, heads=head_num, num_graphs=bs)
    latent = jax.block_until_ready(latent)
    att_w = jax.block_until_ready(att_w)
    node_emb = jax.block_until_ready(node_emb)

    ref_latent, ref_alpha, ref_nodes = _reference(
        x, edge_index, edge_attr, batch, params, head_num, bs)
    ref_latent = jax.block_until_ready(ref_latent)

    E_aug = E0 + N
    assert latent.shape == (bs, latent_dim), latent.shape
    assert ret_ei.shape == (2, E_aug), ret_ei.shape
    assert att_w.shape == (E_aug, head_num), att_w.shape
    assert node_emb.shape == (N, latent_dim), node_emb.shape

    assert jnp.allclose(att_w, ref_alpha, atol=2e-4, rtol=2e-4), \
        float(jnp.max(jnp.abs(att_w - ref_alpha)))
    assert jnp.allclose(node_emb, ref_nodes, atol=2e-4, rtol=2e-4), \
        float(jnp.max(jnp.abs(node_emb - ref_nodes)))
    assert jnp.allclose(latent, ref_latent, atol=2e-4, rtol=2e-4), \
        float(jnp.max(jnp.abs(latent - ref_latent)))

    print("KERNEL_OK")
</pallas_src>

<mosaic_0001>
module attributes {stable_mosaic.version = 11 : i64} {
  func.func @_proj_kernel(%arg0: i32, %arg1: memref<8x16xf32, #tpu.memory_space<vmem>>, %arg2: memref<16x256xf32, #tpu.memory_space<vmem>>, %arg3: memref<1x256xf32, #tpu.memory_space<vmem>>, %arg4: memref<8x256xf32, #tpu.memory_space<vmem>>) attributes {dimension_semantics = [#tpu.dimension_semantics<parallel>], iteration_bounds = array<i64: 2>, scalar_prefetch = 0 : i64, scratch_operands = 0 : i64, tpu.core_type = #tpu.core_type<tc>, window_params = [{transform_indices = @transform_0, window_bounds = array<i64: 8, 16>}, {pipeline_mode = #tpu.pipeline_mode<synchronous>, transform_indices = @transform_1, window_bounds = array<i64: 16, 256>}, {pipeline_mode = #tpu.pipeline_mode<synchronous>, transform_indices = @transform_2, window_bounds = array<i64: 1, 256>}, {transform_indices = @transform_3, window_bounds = array<i64: 8, 256>}]} {
    %c0 = arith.constant 0 : index
    %c0_0 = arith.constant 0 : index
    %0 = vector.load %arg1[%c0, %c0_0] : memref<8x16xf32, #tpu.memory_space<vmem>>, vector<8x16xf32>
    %c0_1 = arith.constant 0 : index
    %c0_2 = arith.constant 0 : index
    %1 = vector.load %arg2[%c0_1, %c0_2] : memref<16x256xf32, #tpu.memory_space<vmem>>, vector<16x256xf32>
    %cst = arith.constant dense<0.000000e+00> : vector<8x256xf32>
    %2 = tpu.matmul %0, %1, %cst {dimension_numbers = #tpu.dot_dimension_numbers<[1], [0], [0], [1], [0, 0, 1, 1], [], []>, precision = #tpu.contract_precision<fp32>} : vector<8x16xf32>, vector<16x256xf32>, vector<8x256xf32> -> vector<8x256xf32>
    %c0_3 = arith.constant 0 : index
    %c0_4 = arith.constant 0 : index
    %3 = vector.load %arg3[%c0_3, %c0_4] : memref<1x256xf32, #tpu.memory_space<vmem>>, vector<1x256xf32>
    %4 = vector.broadcast %3 : vector<1x256xf32> to vector<8x256xf32>
    %5 = arith.addf %2, %4 : vector<8x256xf32>
    %c0_5 = arith.constant 0 : index
    %c0_6 = arith.constant 0 : index
    %6 = vector.load %arg4[%c0_5, %c0_6] : memref<8x256xf32, #tpu.memory_space<vmem>>, vector<8x256xf32>
    tpu.vector_store %arg4[%c0_5, %c0_6], %5 {strides = array<i32>} : memref<8x256xf32, #tpu.memory_space<vmem>>, vector<8x256xf32>,
    return
  }
  func.func @transform_0(%arg0: i32) -> (i32, i32) {
    %c0_i32 = arith.constant 0 : i32
    %c0_i32_0 = arith.constant 0 : i32
    return %arg0, %c0_i32 : i32, i32
  }
  func.func @transform_1(%arg0: i32) -> (i32, i32) {
    %c0_i32 = arith.constant 0 : i32
    %c0_i32_0 = arith.constant 0 : i32
    %c0_i32_1 = arith.constant 0 : i32
    return %c0_i32, %c0_i32_0 : i32, i32
  }
  func.func @transform_2(%arg0: i32) -> (i32, i32) {
    %c0_i32 = arith.constant 0 : i32
    %c0_i32_0 = arith.constant 0 : i32
    %c0_i32_1 = arith.constant 0 : i32
    return %c0_i32, %c0_i32_0 : i32, i32
  }
  func.func @transform_3(%arg0: i32) -> (i32, i32) {
    %c0_i32 = arith.constant 0 : i32
    %c0_i32_0 = arith.constant 0 : i32
    return %arg0, %c0_i32 : i32, i32
  }
}

</mosaic_0001>

<bundles_post_ra>
// kernel: tpu_custom_call.1
= control target key start
LH: loop header
LB: loop body
LE: loop exit
PB: predicated region body
PF: predicated region fallthrough
CT: control target
= control target key end

     0   :  { %8 = vsyncpa [#allocation3], 0  ;;  %s1278_s0 = inlined_call_operand.hbm [shape: f32[16,16], index: 0, kind: input, shape index: {}]   ;;  %s1279_s1 = inlined_call_operand.hbm [shape: f32[16,256], index: 1, kind: input, shape index: {}]   ;;  %s1280_s2 = inlined_call_operand.vmem [shape: f32[1,256], index: 2, kind: input, shape index: {}]   ;;  %s1281_s3 = inlined_call_operand.hbm [shape: f32[16,256], index: 3, kind: output, shape index: {}]  }
   0x1   :  { %10 = vsyncpa [#allocation3 + $0x1], 0 }
   0x2   :  { %11 = vsyncpa [#allocation6], 0 }
   0x3   :  { %12 = vsyncpa [#allocation4], 0 }
   0x4   :  { %14 = vsyncpa [#allocation4 + $0x1], 0  ;;  %s1078_s12 = smov 0   ;;  %s1080_s13 = smov 0  }
   0x5   :  { %s1082_s14 = smov 0   ;;  %s1084_s15 = smov 0  }
   0x6 LB: > { %s1099_s16 = sadd.s32 4294967295, %s1050_s15   ;;  %s810_s17 = sadd.s32 4294967294, %s1050_s15   ;;  %s1050_s15 = sphi %s1084_s15, %s1301_s15   ;;  %s1046_s14 = sphi %s1082_s14, %s1300_s14   ;;  %s1042_s13 = sphi %s1080_s13, %s1299_s13   ;;  %s1038_s12 = sphi %s1078_s12, %s1298_s12  }
   0x7   : > { %p40_p0 = scmp.ne.s32.totalorder %s1042_s13, %s1038_s12  ;;  %p1282_p1 = scmp.eq.s32.totalorder %s1099_s16, 0 }
   0x8   : > { %p112_p3 = scmp.eq.s32.totalorder %s810_s17, 1  ;;  %p811_p5 = scmp.ge.s32.totalorder %s1050_s15, 1 }
   0x9   : > { %p1108_p4 = por %p1282_p1, %p40_p0  ;;  %p119_p7 = scmp.lt.s32.totalorder %s1050_s15, 3 }
   0xa   : > { %p1113_p6 = por %p112_p3, %p40_p0  ;;  %s1052_s21 = smov [#allocation5]  }
   0xb   : > { %s1285_s18 = scalar_select %p1108_p4, 1, 0 }
   0xc   : > { %s1286_s19 = scalar_select %p1113_p6, 1, 0 }
   0xd   : > { %p1118_p8 = pnand %p811_p5, %p119_p7  ;;  %s131_s22 = sshll.u32 %s1052_s21, 4  ;;  %s1122_s22 = int_to_ptr.vmem [resolvable:$true] %s131_s22 }
   0xe   : > { %s1134_s24 = sadd.s32 1, %s1050_s15   ;;  %s27_s25 = sadd.s32 1, %s1046_s14 }
   0xf   : > { %s1287_s20 = scalar_select %p1118_p8, 1, 0 }
  0x10   : > { %p870_p9 = pneg %p1118_p8  ;;  %s24_s26 = ssub.s32 %s1050_s15, %s1134_s24 }
  0x11   : > { %s922_s29 = scalar_lea.hbm %s1279_s1, 512 }
  0x12   : > { %p1129_p11 = pnand %p870_p9, %p1282_p1  ;;  %p923_p12 = scmp.ne.s32.totalorder %s1279_s1, %s922_s29 }
  0x13   : > { %p929_p5 = scmp.lt.u32.totalorder %s922_s29, %s1279_s1 }
  0x14   : > { %p924_p13 = pneg %p1129_p11 }
  0x16   : > { %p925_p0 = pnand %p924_p13, %p923_p12 }
  0x18   : > { %p926_p3 = pneg %p925_p0 }
  0x1a   : > { %p931_p7 = pnand %p929_p5, %p926_p3 }
  0x1c   : > { %934 = shalt.err (!%p931_p7)
}
  0x1d   : > { %s935_s7 = scalar_lea.vmem %s1122_s22, 512  ;;  %p943_p2 = scmp.lt.s32.totalorder %s1122_s22, %s1122_s22 }
  0x1e   : > { %p936_p9 = scmp.ne.s32.totalorder %s1122_s22, %s935_s7  ;;  %p944_p6 = scmp.lt.s32.totalorder %s935_s7, %s935_s7 }
  0x20   : > { %p938_p10 = pnand %p936_p9, %p924_p13  ;;  %p945_p4 = por %p944_p6, %p943_p2 }
  0x22   : > { %p939_p1 = pneg %p938_p10 }
  0x24   : > { %p946_p8 = pnand %p945_p4, %p939_p1 }
  0x26   : > { %949 = shalt.err (!%p946_p8)
}
  0x27   : > { %s1053_s8 = smov 256   ;;  %s1054_s9 = smov 16  }
  0x28   : > { %873 = dma.hbm_to_vmem [thread:$0]  (!%p1129_p11), %s1279_s1, 512, %s1122_s22, [#allocation6], %s1053_s8, %s1053_s8, %s1054_s9  }
  0x29   : > { %p25_p2 = scmp.eq.s32.totalorder %s24_s26, 0  ;;  %p34_p1 = scmp.ne.s32.totalorder %s1046_s14, %s1042_s13 }
  0x2a   : > { %p35_p4 = scmp.eq.s32.totalorder %s1050_s15, 0  ;;  %p883_p6 = scmp.lt.s32.totalorder %s1050_s15, 2 }
  0x2b   : > { %s1165_s17 = scalar_select %p25_p2, %s1046_s14, %s27_s25  }
  0x2c   : > { %p36_p8 = por %p35_p4, %p34_p1  ;;  %p1289_p10 = scmp.eq.s32.totalorder %s1099_s16, 1 }
  0x2d   : > { %s148_s27 = sand.u32 1, %s1046_s14   ;;  %s815_s28 = sshll.u32 %s1050_s15, 7 }
  0x2e   : > { %p1169_p12 = por %p1289_p10, %p34_p1  ;;  %s814_s29 = sshll.u32 %s148_s27, 3 }
  0x2f   : > { %s1178_s4 = scalar_lea.hbm %s1278_s0, %s815_s28  ;;  %s152_s22 = scalar_lea.vmem [#allocation2], %s814_s29 }
  0x30   : > { %s159_s25 = sshll.u32 %s152_s22, 4  ;;  %p1180_p11 = pnand %p883_p6, %p36_p8  ;;  %s1184_s25 = int_to_ptr.vmem [resolvable:$true] %s159_s25 }
  0x31   : > { %s149_s5 = scalar_lea.sflag [#allocation3], %s148_s27  ;;  %s950_s6 = scalar_lea.hbm %s1178_s4, 128 }
  0x32   : > { %p951_p13 = scmp.ne.s32.totalorder %s1178_s4, %s950_s6  ;;  %p952_p0 = pneg %p1180_p11 }
  0x33   : > { %s955_s9 = scalar_lea.hbm %s1278_s0, 256  ;;  %p956_p7 = scmp.lt.u32.totalorder %s1178_s4, %s1278_s0 }
  0x34   : > { %p953_p3 = pnand %p952_p0, %p951_p13  ;;  %p957_p9 = scmp.lt.u32.totalorder %s955_s9, %s950_s6 }
  0x35   : > { %p959_p1 = scmp.lt.u32.totalorder %s950_s6, %s1178_s4 }
  0x36   : > { %p954_p5 = pneg %p953_p3  ;;  %p958_p2 = por %p957_p9, %p956_p7 }
  0x38   : > { %p960_p4 = por %p959_p1, %p958_p2 }
  0x3a   : > { %p961_p6 = pnand %p960_p4, %p954_p5 }
  0x3c   : > { %964 = shalt.err (!%p961_p6)
}
  0x3d   : > { %s965_s27 = scalar_lea.vmem %s1184_s25, 128  ;;  %s1055_s28 = smov [#allocation2]  }
  0x3e   : > { %p966_p8 = scmp.ne.s32.totalorder %s1184_s25, %s965_s27  ;;  %s970_s29 = sshll.u32 %s1055_s28, 4  ;;  %s971_s29 = int_to_ptr.vmem [resolvable:$false] %s970_s29 }
  0x3f   : > { %s972_s23 = scalar_lea.vmem %s971_s29, 256  ;;  %p973_p3 = scmp.lt.s32.totalorder %s1184_s25, %s971_s29 }
  0x40   : > { %p968_p10 = pnand %p966_p8, %p952_p0  ;;  %p974_p7 = scmp.lt.s32.totalorder %s972_s23, %s965_s27 }
  0x42   : > { %p969_p13 = pneg %p968_p10  ;;  %p975_p9 = por %p974_p7, %p973_p3 }
  0x44   : > { %p976_p2 = pnand %p975_p9, %p969_p13 }
  0x46   : > { %979 = shalt.err (!%p976_p2)
}
  0x47   : > { %877 = dma.hbm_to_vmem [thread:$0]  (!%p1180_p11), %s1178_s4, 128, %s1184_s25, %s149_s5  }
  0x48   : > { %p1292_p5 = scmp.ne.s32.totalorder %s1287_s20, 0 }
  0x49   : > { %s1214_s30 = sand.u32 (!%p1292_p5), 1, %s1042_s13   ;;  %p1293_p0 = scmp.ne.s32.totalorder (!%p1292_p5), %s1285_s18, 0 }
  0x4a   : > { %168 = sbr.rel (%p1292_p5) target bundleno = 346 (0x15a), region = 32  ;;  %s817_s22 = sshll.u32 (!%p1292_p5), %s1214_s30, 3 }
  0x4b   : > { %s171_s6 = scalar_lea.sflag (!%p1292_p5), [#allocation3], %s1214_s30  ;;  %s174_s7 = scalar_lea.vmem (!%p1292_p5), [#allocation2], %s817_s22 }
  0x51   : > { %1025 = dma.done.wait (%p1293_p0), %s171_s6, 128  }
  0x52   : > { %1027 = vsyncadd (%p1293_p0), %s171_s6, 4294967168  ;;  %p1294_p1 = scmp.eq.s32.totalorder %s1099_s16, 0 }
  0x54   : > { %1029 = dma.done.wait (%p1294_p1), [#allocation6], 512   ;;  %p1295_p11 = pmov %p1294_p1 }
  0x55   : > { %v1056_v0 = vmov 0.0   ;;  %vm218_vm0 = vcmask 130048   ;;  %v203_v1 = vld [vmem:[#allocation5 + $0x8] sm:$0xff]  ;;  %v205_v2 = vld [vmem:[#allocation5 + $0x18] sm:$0xff]  ;;  %v202_v3 = vld [vmem:[#allocation5] sm:$0xff]  ;;  %v208_v40 = vlaneseq  ;;  %s819_s4 = sshll.u32 %s1214_s30, 4 }
  0x56   : > { %1031 = vsyncadd (%p1295_p11), [#allocation6], 4294966784  ;;  %543 = vmatprep.mubr.f32.mxu0 %v1056_v0  ;;  %290 = vmatprep.mubr.f32.mxu1 %v1056_v0  ;;  %v222_v4 = vand.u32 4294901760, %v203_v1  ;;  %v226_v5 = vand.u32 4294901760, %v205_v2  ;;  %v204_v6 = vld [vmem:[#allocation5 + $0x10] sm:$0xff]  ;;  %v224_v7 = vand.u32 4294901760, %v202_v3 }
  0x57   : > { %v201_v8 = vld [vmem:[%s174_s7] sm:$0xff]  ;;  %v228_v9 = vand.u32 4294901760, %v204_v6  ;;  %v209_v41 = vshrl.u32 %v208_v40, 7  ;;  %s825_s25 = sshll.u32 %s1099_s16, 8  ;;  %s200_s26 = scalar_lea.vmem [#allocation7], %s819_s4 }
  0x58   : > { %v220_v10 = vsel %vm218_vm0, %v201_v8, 0  ;;  %v826_v11 = vpack.c.bf16 %v226_v5, %v222_v4  ;;  %v303_v12 = vsub.f32 %v203_v1, %v222_v4  ;;  %v315_v13 = vsub.f32 %v205_v2, %v226_v5  ;;  %v206_v43 = vld [vmem:[%s1280_s2] sm:$0x3]  ;;  %s730_s5 = sshll.u32 %s200_s26, 4  ;;  %s1234_s10 = scalar_lea.hbm %s1281_s3, %s825_s25  ;;  %s1236_s5 = int_to_ptr.vmem [resolvable:$true] %s730_s5 }
  0x59   : > { %v309_v14 = vsub.f32 %v202_v3, %v224_v7  ;;  %v828_v15 = vpack.c.bf16 %v228_v9, %v224_v7  ;;  %v321_v16 = vsub.f32 %v204_v6, %v228_v9  ;;  %v291_v17 = vand.u32 4294901760, %v220_v10  ;;  %s716_s11 = scalar_lea.sflag [#allocation4], %s1214_s30  ;;  %s980_s27 = scalar_lea.vmem %s1236_s5, 256 }
  0x5a   : > { %839 = vmatprep.subr.bf16.mxu0 %v826_v11  ;;  %827 = vmatprep.subr.bf16.mxu1 %v826_v11  ;;  %v304_v18 = vand.u32 4294901760, %v303_v12  ;;  %v316_v19 = vand.u32 4294901760, %v315_v13  ;;  %v834_v38 = vpack.c.bf16 %v315_v13, %v303_v12  ;;  %v210_v42 = vsub.s32 0, %v209_v41  ;;  %p981_p4 = scmp.ne.s32.totalorder %s1236_s5, %s980_s27  ;;  %s1057_s16 = smov [#allocation7]  }
  0x5b   : > { %v310_v20 = vand.u32 4294901760, %v309_v14  ;;  %841 = vmatpush1.bf16.msra.mxu0 %v828_v15  ;;  %829 = vmatpush1.bf16.msra.mxu1 %v828_v15  ;;  %v292_v21 = vsub.f32 %v220_v10, %v291_v17  ;;  %v322_v22 = vand.u32 4294901760, %v321_v16  ;;  %v836_v39 = vpack.c.bf16 %v321_v16, %v309_v14  ;;  %s984_s28 = sshll.u32 %s1057_s16, 4  ;;  %s985_s28 = int_to_ptr.vmem [resolvable:$false] %s984_s28 }
  0x5c   : > { %v305_v23 = vsub.f32 %v303_v12, %v304_v18  ;;  %v317_v24 = vsub.f32 %v315_v13, %v316_v19  ;;  %v842_v25 = vpack.c.bf16 %v316_v19, %v304_v18  ;;  %v214_v44 = vsub.s32 1, %v209_v41  ;;  %p982_p6 = pnand %p981_p4, %p1169_p12  ;;  %s986_s29 = scalar_lea.vmem %s985_s28, 512 }
  0x5d   : > { %v311_v26 = vsub.f32 %v309_v14, %v310_v20  ;;  %v293_v27 = vand.u32 4294901760, %v292_v21  ;;  %v323_v28 = vsub.f32 %v321_v16, %v322_v22  ;;  %v844_v29 = vpack.c.bf16 %v322_v22, %v310_v20  ;;  %p987_p10 = scmp.lt.s32.totalorder %s1236_s5, %s985_s28  ;;  %p988_p13 = scmp.lt.s32.totalorder %s986_s29, %s980_s27 }
  0x5e   : > { %v306_v30 = vand.u32 4294901760, %v305_v23  ;;  %v318_v31 = vand.u32 4294901760, %v317_v24  ;;  %843 = vmatprep.subr.bf16.mxu0 %v842_v25  ;;  %v211_v47 = vrot.slane %v206_v43, %v210_v42  ;;  %v215_v48 = vrot.slane %v206_v43, %v214_v44  ;;  %p983_p8 = pneg %p982_p6 }
  0x5f   : > { %v312_v32 = vand.u32 4294901760, %v311_v26  ;;  %547 = vmatmul.mubr.f32.vlgmr.msra.gmra.mrb[0].mxu0 %v293_v27  ;;  %v294_v33 = vsub.f32 %v292_v21, %v293_v27  ;;  %v324_v34 = vand.u32 4294901760, %v323_v28  ;;  %p989_p3 = por %p988_p13, %p987_p10 }
  0x60   : > { %v830_v35 = vpack.c.bf16 %v318_v31, %v306_v30  ;;  %845 = vmatpush1.bf16.msra.mxu0 %v844_v29  ;;  %629 = vmatprep.mubr.f32.mxu0 %v1056_v0 }
  0x61   : > { %v295_v36 = vand.u32 4294901760, %v294_v33  ;;  %v832_v37 = vpack.c.bf16 %v324_v34, %v312_v32  ;;  %847 = vmatprep.subr.bf16.mxu0 %v826_v11  ;;  %p990_p7 = pnand %p989_p3, %p983_p8 }
  0x62   : > { %831 = vmatprep.subr.bf16.mxu1 %v830_v35 }
  0x63   : > { %296 = vmatmul.mubr.f32.vlgmr.msra.gmra.mrb[0].mxu1 %v295_v36 }
  0x64   : > { %833 = vmatpush1.bf16.msra.mxu1 %v832_v37  ;;  %386 = vmatprep.mubr.f32.mxu1 %v1056_v0 }
  0x65   : > { %835 = vmatprep.subr.bf16.mxu1 %v834_v38 }
  0x67   : > { %631 = vmatmul.mubr.f32.vlgmr.msra.gmra.mrb[0].mxu0 %v291_v17 }
  0x68   : > { %849 = vmatpush1.bf16.msra.mxu0 %v828_v15  ;;  %705 = vmatprep.mubr.f32.mxu0 %v1056_v0 }
  0x6b   : > { %388 = vmatmul.mubr.f32.vlgmr.msra.gmra.mrb[0].mxu1 %v291_v17 }
  0x6c   : > { %837 = vmatpush1.bf16.msra.mxu1 %v836_v39  ;;  %466 = vmatprep.mubr.f32.mxu1 %v1056_v0 }
  0x6f   : > { %707 = vmatmul.mubr.f32.vlgmr.msra.gmra.mrb[0].mxu0 %v291_v17 }
  0x73   : > { %469 = vmatmul.mubr.f32.vlgmr.msra.gmra.mrb[0].mxu1 %v292_v21 }
 0x142   : > { %v708_v45 = vpop.f32.mrb[0].mxu0 }
 0x143   : > { %v710_v46 = vpop.f32.mrb[1].mxu0 }
 0x146   : > { %v470_v49 = vpop.f32.mrb[0].mxu1 }
 0x147   : > { %v850_v50 = vadd.f32 %v470_v49, %v211_v47  ;;  %v472_v51 = vpop.f32.mrb[1].mxu1 }
 0x148   : > { %v852_v52 = vadd.f32 %v472_v51, %v215_v48 }
 0x149   : > { %v851_v53 = vadd.f32 %v850_v50, %v708_v45 }
 0x14a   : > { %v853_v54 = vadd.f32 %v852_v52, %v710_v46 }
 0x14b   : > { %713 = vst [vmem:[%s200_s26] sm:$0xff] %v851_v53 }
 0x14c   : > { %714 = vst [vmem:[%s200_s26 + $0x8] sm:$0xff] %v853_v54 }
 0x14d   : > { %993 = shalt.err (!%p990_p7)
}
 0x14e   : > { %s994_s23 = scalar_lea.hbm %s1234_s10, 256  ;;  %s998_s6 = scalar_lea.hbm %s1281_s3, 512 }
 0x14f   : > { %p995_p9 = scmp.ne.s32.totalorder %s1234_s10, %s994_s23  ;;  %p999_p0 = scmp.lt.u32.totalorder %s1234_s10, %s1281_s3 }
 0x150   : > { %p1000_p1 = scmp.lt.u32.totalorder %s998_s6, %s994_s23  ;;  %p1002_p4 = scmp.lt.u32.totalorder %s994_s23, %s1234_s10 }
 0x151   : > { %p996_p2 = pnand %p995_p9, %p1169_p12 }
 0x152   : > { %p1001_p11 = por %p1000_p1, %p999_p0 }
 0x153   : > { %p997_p5 = pneg %p996_p2 }
 0x154   : > { %p1003_p6 = por %p1002_p4, %p1001_p11 }
 0x156   : > { %p1004_p8 = pnand %p1003_p6, %p997_p5 }
 0x158   : > { %1007 = shalt.err (!%p1004_p8)
}
 0x159   : > { %868 = dma.vmem_to_hbm [thread:$0]  (%p1169_p12), %s1236_s5, 256, %s1234_s10, %s716_s11  }
 0x15a PF: > { %s742_s20 = sand.u32 1, %s1038_s12   ;;  %p1296_p10 = scmp.ne.s32.totalorder %s1286_s19, 0 }
 0x15b   : > { %p1297_p13 = scmp.ge.s32.totalorder %s1050_s15, 2  ;;  %s743_s4 = scalar_lea.sflag [#allocation4], %s742_s20 }
 0x15d   : > { %p879_p3 = pnand %p1297_p13, %p1296_p10 }
 0x15f   : > { %1033 = dma.done.wait (!%p879_p3), %s743_s4, 256  }
 0x160   : > { %1035 = vsyncadd (!%p879_p3), %s743_s4, 4294967040  ;;  %p17_p7 = scmp.ge.s32.totalorder %s1134_s24, 4   ;;  %s1298_s12 = smov %s1042_s13 }
 0x161   : > { %s1299_s13 = smov %s1046_s14  ;;  %s1300_s14 = smov %s1165_s17 }
 0x162   : > { %s1301_s15 = smov %s1134_s24  ;;  %19 = sbr.rel (!%p17_p7) target bundleno = 6 (0x6), region = 81 }
 0x169   :  { %748 = vsyncpa [#allocation3], 1 }
 0x16a   :  { %750 = vsyncpa [#allocation3 + $0x1], 1 }
 0x16b   :  { %751 = vsyncpa [#allocation6], 1 }
 0x16c   :  { %752 = vsyncpa [#allocation4], 1 }
 0x16d   :  { %754 = vsyncpa [#allocation4 + $0x1], 1 }

</bundles_post_ra>
